<compile_context>
chip_gen: v7x
topology: tpu7x:2x2x1
jax: 0.10.0
libtpu: 0.0.40
codegen_flags: <defaults>
</compile_context>

<pallas_src>
import math
import jax
import jax.numpy as jnp
import numpy as np
from jax.experimental import pallas as pl
from jax.experimental.pallas import tpu as pltpu

MAX_VAL = 1000000000000.0


# ------------------------------ kernel ---------------------------------------


def _adapt_attn_kernel(q_ref, k_ref, v_ref, bias_ref, rwrel_ref, users_ref,
                       wf_ref, bf_ref, wm_ref, out_ref, p_ref):
    # one batch per grid point; all H heads processed together
    q = q_ref[0]                      # (H, l, d_k)
    k = k_ref[0]                      # (H, l, d_k)
    v = v_ref[0]                      # (H, l, d_k)
    mb = bias_ref[0, 0]               # (l, l)   additive mask bias (0 or -MAX_VAL)
    rw_rel = rwrel_ref[...]           # (H, l, l) hoisted rel-pos reweight (0 for global heads)
    u = users_ref[0]                  # (l, d)
    wf = wf_ref[...]                  # (H, d)   folded user-proj reweight vectors
    bf = bf_ref[...]                  # (H, 1)   folded user-proj + mlp bias
    wm = wm_ref[...]                  # (H, d_k) per-head mlp weight (0 for global heads)

    d_k = q.shape[-1]
    inv_sqrt = 1.0 / math.sqrt(d_k)

    # raw attention scores for all heads at once (batched MXU matmul)
    s = jnp.einsum("hqd,hkd->hqk", q, k,
                   preferred_element_type=jnp.float32) * inv_sqrt        # (H, l, l)

    # folded user-projection reweight: rw_u[h, p] = <users[p] W_h^T + b_h, w_h> + mlp_b_h
    rw_u = jnp.einsum("hd,ld->hl", wf, u,
                      preferred_element_type=jnp.float32) + bf           # (H, l)
    # value reweight: rw_v[h, p] = <v[h, p], w_h>
    rw_v = jnp.sum(v * wm[:, None, :], axis=-1)                          # (H, l)

    # linear-MLP reweight, decomposed (global heads contribute exactly zero)
    s = s + rw_rel + rw_v[:, :, None] + rw_v[:, None, :] + rw_u[:, :, None]

    # additive mask bias + softmax (exact divide: matches jax.nn.softmax to f32 eps)
    s = s + mb[None, :, :]
    s_max = jnp.max(s, axis=-1, keepdims=True)
    e = jnp.exp(s - s_max)
    denom = jnp.sum(e, axis=-1, keepdims=True)
    p = e / denom

    p_ref[0] = p
    out_ref[0] = jnp.einsum("hqk,hkd->hqd", p, v,
                            preferred_element_type=jnp.float32)


# ------------------------------ wrapper --------------------------------------


def adapt_attention_forward(query, key, value, mask, users, params,
                            global_num, local_num, n):
    """Pallas implementation of AdaptAttention.forward (dropout = identity)."""
    b, h, l, d_k = query.shape
    d = users.shape[-1]
    assert h == global_num + local_num and l == n

    # ---- glue: hoist/fold the linear reweighting parameters --------------------
    mlp_w = params["mlp_w"].reshape(local_num, d_k)                      # (local, d_k)
    mlp_b = params["mlp_b"].reshape(local_num)                           # (local,)

    # rel-position reweight table: per head, (2n-1,) = rel_pos_emb slice @ w_i,
    # gathered with `distance` to an (local, n, n) array.
    rel_tab = params["rel_pos_emb"].reshape(2 * n - 1, local_num, d_k)
    rw_rel_tab = jnp.einsum("thd,hd->ht", rel_tab, mlp_w)                # (local, 2n-1)
    pos = jnp.arange(n)
    distance = pos[None, :] - pos[:, None] + n - 1                       # (n, n)
    rw_rel_local = rw_rel_tab[:, distance]                               # (local, n, n)

    # fold user projection: w_fold_i = W_i^T w_i ; b_fold_i = <b_u_i, w_i> + mlp_b_i
    W = params["user_proj_w"].reshape(local_num, d_k, d)                 # per-head (d_k, d)
    bU = params["user_proj_b"].reshape(local_num, d_k)
    w_fold_local = jnp.einsum("hkd,hk->hd", W, mlp_w)                    # (local, d)
    b_fold_local = jnp.einsum("hk,hk->h", bU, mlp_w) + mlp_b             # (local,)

    # zero-pad global heads so a single fused kernel treats all heads uniformly
    def zpad(x):
        z = jnp.zeros((global_num,) + x.shape[1:], x.dtype)
        return jnp.concatenate([z, x], axis=0)

    rw_rel = zpad(rw_rel_local)                                          # (H, n, n)
    w_fold = zpad(w_fold_local)                                          # (H, d)
    b_fold = zpad(b_fold_local)[:, None]                                 # (H, 1)
    wm_full = zpad(mlp_w)                                                # (H, d_k)

    # additive mask bias (compare+select hoisted out of the kernel)
    mask_bias = jnp.where(mask == 0, -MAX_VAL, 0.0).astype(jnp.float32)  # (b, 1, l, l)

    batch_blk4 = lambda shape: pl.BlockSpec(shape, lambda bi: (bi, 0, 0, 0))
    const_blk = lambda shape: pl.BlockSpec(shape, lambda bi: tuple(0 for _ in shape))

    out, p_attn = pl.pallas_call(
        _adapt_attn_kernel,
        out_shape=(jax.ShapeDtypeStruct((b, h, l, d_k), jnp.float32),
                   jax.ShapeDtypeStruct((b, h, l, l), jnp.float32)),
        grid=(b,),
        in_specs=[
            batch_blk4((1, h, l, d_k)),                                  # q
            batch_blk4((1, h, l, d_k)),                                  # k
            batch_blk4((1, h, l, d_k)),                                  # v
            batch_blk4((1, 1, l, l)),                                    # mask bias
            const_blk((h, l, l)),                                        # rw_rel   (resident)
            pl.BlockSpec((1, l, d), lambda bi: (bi, 0, 0)),              # users
            const_blk((h, d)),                                           # w_fold   (resident)
            const_blk((h, 1)),                                           # b_fold   (resident)
            const_blk((h, d_k)),                                         # mlp_w    (resident)
        ],
        out_specs=(batch_blk4((1, h, l, d_k)),
                   batch_blk4((1, h, l, l))),
        compiler_params=pltpu.CompilerParams(
            dimension_semantics=("parallel",),
            vmem_limit_bytes=64 * 1024 * 1024),
    )(query, key, value, mask_bias, rw_rel, users, w_fold, b_fold, wm_full)

    if global_num > 0:
        return out, (p_attn[:, :global_num], p_attn[:, global_num:])
    return out, p_attn


# ------------------------------ pure-JAX reference ---------------------------


def reference_forward(query, key, value, mask, users, params,
                      global_num, local_num, n):
    """Direct transcription of the PyTorch forward (dropout = identity)."""
    b, h, l, d_k = query.shape
    q_g, k_g, v_g = query[:, :global_num], key[:, :global_num], value[:, :global_num]
    q_l, k_l, v_l = query[:, global_num:], key[:, global_num:], value[:, global_num:]

    p_attn_g = out_g = None
    if global_num > 0:
        s_g = jnp.einsum("bhqd,bhkd->bhqk", q_g, k_g) / math.sqrt(d_k)
        s_g = jnp.where(mask == 0, -MAX_VAL, s_g)
        p_attn_g = jax.nn.softmax(s_g, axis=-1)
        out_g = jnp.einsum("bhqk,bhkd->bhqd", p_attn_g, v_g)

    s_l = jnp.einsum("bhqd,bhkd->bhqk", q_l, k_l) / math.sqrt(d_k)

    pos = jnp.arange(n)
    distance = pos[None, :] - pos[:, None] + n - 1
    rel = params["rel_pos_emb"][distance].reshape(l, l, local_num, d_k)
    rel = rel.transpose(2, 0, 1, 3)[None]                                  # (1, local, l, l, d_k)

    uproj = users @ params["user_proj_w"].T + params["user_proj_b"]        # (b, l, local*d_k)
    uproj = uproj.reshape(b, l, local_num, d_k).transpose(0, 2, 1, 3)      # (b, local, l, d_k)

    inputs = (jnp.broadcast_to(rel, (b, local_num, l, l, d_k))
              + v_l[:, :, :, None, :]
              + v_l[:, :, None, :, :]
              + uproj[:, :, :, None, :])

    rws = []
    for i in range(local_num):
        rw = inputs[:, i] @ params["mlp_w"][i].T + params["mlp_b"][i]      # (b, l, l, 1)
        rws.append(rw[..., 0][:, None])
    reweight = jnp.concatenate(rws, axis=1)                                # (b, local, l, l)

    s_l = s_l + reweight
    s_l = jnp.where(mask == 0, -MAX_VAL, s_l)
    p_attn_l = jax.nn.softmax(s_l, axis=-1)
    out_l = jnp.einsum("bhqk,bhkd->bhqd", p_attn_l, v_l)

    if global_num > 0:
        return jnp.concatenate([out_g, out_l], axis=1), (p_attn_g, p_attn_l)
    return out_l, p_attn_l


# ------------------------------ main ------------------------------------------


if __name__ == "__main__":
    # module config (small, consistent with AdaptAttention(n, d, d_k, args))
    n = 8                       # max sequence length
    d_k = 8
    num_attention_heads = 4     # args.num_attention_heads
    local_num = 2               # args.locker_config['num_attention_heads']
    global_num = num_attention_heads - local_num
    d = num_attention_heads * d_k
    b = 2
    l = n

    root = jax.random.PRNGKey(0)
    keys = jax.random.split(root, 10)

    # deterministic parameter init (shapes from __init__)
    params = {
        "rel_pos_emb": 0.02 * jax.random.normal(keys[0], (2 * n - 1, d_k * local_num), jnp.float32),
        "user_proj_w": 0.05 * jax.random.normal(keys[1], (d_k * local_num, d), jnp.float32),
        "user_proj_b": 0.05 * jax.random.normal(keys[2], (d_k * local_num,), jnp.float32),
        "mlp_w": 0.1 * jax.random.normal(keys[3], (local_num, 1, d_k), jnp.float32),
        "mlp_b": 0.1 * jax.random.normal(keys[4], (local_num, 1), jnp.float32),
    }
    # TODO(synk): abs_pos_emb_key / abs_pos_emb_query are unused in forward; omitted.

    query = jax.random.normal(keys[5], (b, num_attention_heads, l, d_k), jnp.float32)
    key_ = jax.random.normal(keys[6], (b, num_attention_heads, l, d_k), jnp.float32)
    value = jax.random.normal(keys[7], (b, num_attention_heads, l, d_k), jnp.float32)
    users = jax.random.normal(keys[8], (b, l, d), jnp.float32)

    # causal mask, (b, 1, l, l), 0 = masked out
    causal = jnp.tril(jnp.ones((l, l), jnp.float32))
    mask = jnp.broadcast_to(causal[None, None], (b, 1, l, l))

    out, (p_g, p_l) = adapt_attention_forward(
        query, key_, value, mask, users, params, global_num, local_num, n)
    jax.block_until_ready(out)
    jax.block_until_ready(p_g)
    jax.block_until_ready(p_l)

    ref_out, (ref_pg, ref_pl) = reference_forward(
        query, key_, value, mask, users, params, global_num, local_num, n)

    np.testing.assert_allclose(np.asarray(out), np.asarray(ref_out), rtol=1e-4, atol=1e-4)
    np.testing.assert_allclose(np.asarray(p_g), np.asarray(ref_pg), rtol=1e-4, atol=1e-4)
    np.testing.assert_allclose(np.asarray(p_l), np.asarray(ref_pl), rtol=1e-4, atol=1e-4)

    print("KERNEL_OK")
</pallas_src>

<mosaic_0001>
module attributes {stable_mosaic.version = 11 : i64} {
  func.func @_adapt_attn_kernel(%arg0: i32, %arg1: memref<1x4x8x8xf32, #tpu.memory_space<vmem>>, %arg2: memref<1x4x8x8xf32, #tpu.memory_space<vmem>>, %arg3: memref<1x4x8x8xf32, #tpu.memory_space<vmem>>, %arg4: memref<1x1x8x8xf32, #tpu.memory_space<vmem>>, %arg5: memref<4x8x8xf32, #tpu.memory_space<vmem>>, %arg6: memref<1x8x32xf32, #tpu.memory_space<vmem>>, %arg7: memref<4x32xf32, #tpu.memory_space<vmem>>, %arg8: memref<4x1xf32, #tpu.memory_space<vmem>>, %arg9: memref<4x8xf32, #tpu.memory_space<vmem>>, %arg10: memref<1x4x8x8xf32, #tpu.memory_space<vmem>>, %arg11: memref<1x4x8x8xf32, #tpu.memory_space<vmem>>) attributes {dimension_semantics = [#tpu.dimension_semantics<parallel>], iteration_bounds = array<i64: 2>, scalar_prefetch = 0 : i64, scratch_operands = 0 : i64, tpu.core_type = #tpu.core_type<tc>, window_params = [{transform_indices = @transform_0, window_bounds = array<i64: 1, 4, 8, 8>}, {transform_indices = @transform_1, window_bounds = array<i64: 1, 4, 8, 8>}, {transform_indices = @transform_2, window_bounds = array<i64: 1, 4, 8, 8>}, {transform_indices = @transform_3, window_bounds = array<i64: 1, 1, 8, 8>}, {pipeline_mode = #tpu.pipeline_mode<synchronous>, transform_indices = @transform_4, window_bounds = array<i64: 4, 8, 8>}, {transform_indices = @transform_5, window_bounds = array<i64: 1, 8, 32>}, {pipeline_mode = #tpu.pipeline_mode<synchronous>, transform_indices = @transform_6, window_bounds = array<i64: 4, 32>}, {pipeline_mode = #tpu.pipeline_mode<synchronous>, transform_indices = @transform_7, window_bounds = array<i64: 4, 1>}, {pipeline_mode = #tpu.pipeline_mode<synchronous>, transform_indices = @transform_8, window_bounds = array<i64: 4, 8>}, {transform_indices = @transform_9, window_bounds = array<i64: 1, 4, 8, 8>}, {transform_indices = @transform_10, window_bounds = array<i64: 1, 4, 8, 8>}]} {
    %c0 = arith.constant 0 : index
    %c0_0 = arith.constant 0 : index
    %c0_1 = arith.constant 0 : index
    %c0_2 = arith.constant 0 : index
    %0 = vector.load %arg1[%c0, %c0_0, %c0_1, %c0_2] : memref<1x4x8x8xf32, #tpu.memory_space<vmem>>, vector<1x4x8x8xf32>
    %1 = vector.shape_cast %0 : vector<1x4x8x8xf32> to vector<4x8x8xf32>
    %c0_3 = arith.constant 0 : index
    %c0_4 = arith.constant 0 : index
    %c0_5 = arith.constant 0 : index
    %c0_6 = arith.constant 0 : index
    %2 = vector.load %arg2[%c0_3, %c0_4, %c0_5, %c0_6] : memref<1x4x8x8xf32, #tpu.memory_space<vmem>>, vector<1x4x8x8xf32>
    %3 = vector.shape_cast %2 : vector<1x4x8x8xf32> to vector<4x8x8xf32>
    %c0_7 = arith.constant 0 : index
    %c0_8 = arith.constant 0 : index
    %c0_9 = arith.constant 0 : index
    %c0_10 = arith.constant 0 : index
    %4 = vector.load %arg3[%c0_7, %c0_8, %c0_9, %c0_10] : memref<1x4x8x8xf32, #tpu.memory_space<vmem>>, vector<1x4x8x8xf32>
    %5 = vector.shape_cast %4 : vector<1x4x8x8xf32> to vector<4x8x8xf32>
    %c0_11 = arith.constant 0 : index
    %c0_12 = arith.constant 0 : index
    %c0_13 = arith.constant 0 : index
    %c0_14 = arith.constant 0 : index
    %6 = vector.load %arg4[%c0_11, %c0_12, %c0_13, %c0_14] : memref<1x1x8x8xf32, #tpu.memory_space<vmem>>, vector<1x1x8x8xf32>
    %7 = vector.shape_cast %6 : vector<1x1x8x8xf32> to vector<8x8xf32>
    %c0_15 = arith.constant 0 : index
    %c0_16 = arith.constant 0 : index
    %c0_17 = arith.constant 0 : index
    %8 = vector.load %arg5[%c0_15, %c0_16, %c0_17] : memref<4x8x8xf32, #tpu.memory_space<vmem>>, vector<4x8x8xf32>
    %c0_18 = arith.constant 0 : index
    %c0_19 = arith.constant 0 : index
    %c0_20 = arith.constant 0 : index
    %9 = vector.load %arg6[%c0_18, %c0_19, %c0_20] : memref<1x8x32xf32, #tpu.memory_space<vmem>>, vector<1x8x32xf32>
    %10 = vector.shape_cast %9 : vector<1x8x32xf32> to vector<8x32xf32>
    %c0_21 = arith.constant 0 : index
    %c0_22 = arith.constant 0 : index
    %11 = vector.load %arg7[%c0_21, %c0_22] : memref<4x32xf32, #tpu.memory_space<vmem>>, vector<4x32xf32>
    %c0_23 = arith.constant 0 : index
    %c0_24 = arith.constant 0 : index
    %12 = vector.load %arg8[%c0_23, %c0_24] : memref<4x1xf32, #tpu.memory_space<vmem>>, vector<4x1xf32>
    %c0_25 = arith.constant 0 : index
    %c0_26 = arith.constant 0 : index
    %13 = vector.load %arg9[%c0_25, %c0_26] : memref<4x8xf32, #tpu.memory_space<vmem>>, vector<4x8xf32>
    "tpu.trace_start"() <{level = 10 : i32, message = "hqd,hkd->hqk"}> : () -> ()
    %cst = arith.constant dense<0.000000e+00> : vector<4x8x8xf32>
    %14 = tpu.matmul %1, %3, %cst {dimension_numbers = #tpu.dot_dimension_numbers<[2], [2], [1], [1], [0, 0, 0, 1, 1, 1], [0], [0]>} : vector<4x8x8xf32>, vector<4x8x8xf32>, vector<4x8x8xf32> -> vector<4x8x8xf32>
    "tpu.trace_stop"() : () -> ()
    %cst_27 = arith.constant 0.353553385 : f32
    %15 = vector.broadcast %cst_27 : f32 to vector<4x8x8xf32>
    %16 = arith.mulf %14, %15 : vector<4x8x8xf32>
    "tpu.trace_start"() <{level = 10 : i32, message = "hd,ld->hl"}> : () -> ()
    %cst_28 = arith.constant dense<0.000000e+00> : vector<4x8xf32>
    %17 = tpu.matmul %11, %10, %cst_28 {dimension_numbers = #tpu.dot_dimension_numbers<[1], [1], [0], [0], [0, 0, 1, 0], [], []>} : vector<4x32xf32>, vector<8x32xf32>, vector<4x8xf32> -> vector<4x8xf32>
    "tpu.trace_stop"() : () -> ()
    %18 = vector.broadcast %12 : vector<4x1xf32> to vector<4x8xf32>
    %19 = arith.addf %17, %18 : vector<4x8xf32>
    %20 = vector.shape_cast %13 : vector<4x8xf32> to vector<4x1x8xf32>
    %21 = vector.broadcast %20 : vector<4x1x8xf32> to vector<4x8x8xf32>
    %22 = arith.mulf %5, %21 : vector<4x8x8xf32>
    %cst_29 = arith.constant dense<0.000000e+00> : vector<4x8xf32>
    %23 = vector.multi_reduction <add>, %22, %cst_29 [2] : vector<4x8x8xf32> to vector<4x8xf32>
    %24 = arith.addf %16, %8 : vector<4x8x8xf32>
    %25 = vector.shape_cast %23 : vector<4x8xf32> to vector<4x8x1xf32>
    %26 = vector.broadcast %25 : vector<4x8x1xf32> to vector<4x8x8xf32>
    %27 = arith.addf %24, %26 : vector<4x8x8xf32>
    %28 = vector.shape_cast %23 : vector<4x8xf32> to vector<4x1x8xf32>
    %29 = vector.broadcast %28 : vector<4x1x8xf32> to vector<4x8x8xf32>
    %30 = arith.addf %27, %29 : vector<4x8x8xf32>
    %31 = vector.shape_cast %19 : vector<4x8xf32> to vector<4x8x1xf32>
    %32 = vector.broadcast %31 : vector<4x8x1xf32> to vector<4x8x8xf32>
    %33 = arith.addf %30, %32 : vector<4x8x8xf32>
    %34 = vector.shape_cast %7 : vector<8x8xf32> to vector<1x8x8xf32>
    %35 = vector.broadcast %34 : vector<1x8x8xf32> to vector<4x8x8xf32>
    %36 = arith.addf %33, %35 : vector<4x8x8xf32>
    %cst_30 = arith.constant dense<0xFF800000> : vector<4x8xf32>
    %37 = vector.multi_reduction <maximumf>, %36, %cst_30 [2] : vector<4x8x8xf32> to vector<4x8xf32>
    %38 = vector.shape_cast %37 : vector<4x8xf32> to vector<4x8x1xf32>
    %39 = vector.broadcast %38 : vector<4x8x1xf32> to vector<4x8x8xf32>
    %40 = arith.subf %36, %39 : vector<4x8x8xf32>
    %41 = math.exp %40 : vector<4x8x8xf32>
    %cst_31 = arith.constant dense<0.000000e+00> : vector<4x8xf32>
    %42 = vector.multi_reduction <add>, %41, %cst_31 [2] : vector<4x8x8xf32> to vector<4x8xf32>
    %43 = vector.shape_cast %42 : vector<4x8xf32> to vector<4x8x1xf32>
    %44 = vector.broadcast %43 : vector<4x8x1xf32> to vector<4x8x8xf32>
    %45 = arith.divf %41, %44 : vector<4x8x8xf32>
    %c0_32 = arith.constant 0 : index
    %c0_33 = arith.constant 0 : index
    %c0_34 = arith.constant 0 : index
    %c0_35 = arith.constant 0 : index
    %46 = vector.load %arg11[%c0_32, %c0_33, %c0_34, %c0_35] : memref<1x4x8x8xf32, #tpu.memory_space<vmem>>, vector<1x4x8x8xf32>
    %47 = vector.shape_cast %46 : vector<1x4x8x8xf32> to vector<4x8x8xf32>
    %48 = vector.shape_cast %45 : vector<4x8x8xf32> to vector<1x4x8x8xf32>
    tpu.vector_store %arg11[%c0_32, %c0_33, %c0_34, %c0_35], %48 {strides = array<i32>} : memref<1x4x8x8xf32, #tpu.memory_space<vmem>>, vector<1x4x8x8xf32>,
    "tpu.trace_start"() <{level = 10 : i32, message = "hqk,hkd->hqd"}> : () -> ()
    %cst_36 = arith.constant dense<0.000000e+00> : vector<4x8x8xf32>
    %49 = tpu.matmul %45, %5, %cst_36 {dimension_numbers = #tpu.dot_dimension_numbers<[2], [1], [1], [2], [0, 0, 0, 1, 1, 2], [0], [0]>} : vector<4x8x8xf32>, vector<4x8x8xf32>, vector<4x8x8xf32> -> vector<4x8x8xf32>
    "tpu.trace_stop"() : () -> ()
    %c0_37 = arith.constant 0 : index
    %c0_38 = arith.constant 0 : index
    %c0_39 = arith.constant 0 : index
    %c0_40 = arith.constant 0 : index
    %50 = vector.load %arg10[%c0_37, %c0_38, %c0_39, %c0_40] : memref<1x4x8x8xf32, #tpu.memory_space<vmem>>, vector<1x4x8x8xf32>
    %51 = vector.shape_cast %50 : vector<1x4x8x8xf32> to vector<4x8x8xf32>
    %52 = vector.shape_cast %49 : vector<4x8x8xf32> to vector<1x4x8x8xf32>
    tpu.vector_store %arg10[%c0_37, %c0_38, %c0_39, %c0_40], %52 {strides = array<i32>} : memref<1x4x8x8xf32, #tpu.memory_space<vmem>>, vector<1x4x8x8xf32>,
    return
  }
  func.func @transform_0(%arg0: i32) -> (i32, i32, i32, i32) {
    %c0_i32 = arith.constant 0 : i32
    %c0_i32_0 = arith.constant 0 : i32
    %c0_i32_1 = arith.constant 0 : i32
    %c0_i32_2 = arith.constant 0 : i32
    return %arg0, %c0_i32, %c0_i32_0, %c0_i32_1 : i32, i32, i32, i32
  }
  func.func @transform_1(%arg0: i32) -> (i32, i32, i32, i32) {
    %c0_i32 = arith.constant 0 : i32
    %c0_i32_0 = arith.constant 0 : i32
    %c0_i32_1 = arith.constant 0 : i32
    %c0_i32_2 = arith.constant 0 : i32
    return %arg0, %c0_i32, %c0_i32_0, %c0_i32_1 : i32, i32, i32, i32
  }
  func.func @transform_2(%arg0: i32) -> (i32, i32, i32, i32) {
    %c0_i32 = arith.constant 0 : i32
    %c0_i32_0 = arith.constant 0 : i32
    %c0_i32_1 = arith.constant 0 : i32
    %c0_i32_2 = arith.constant 0 : i32
    return %arg0, %c0_i32, %c0_i32_0, %c0_i32_1 : i32, i32, i32, i32
  }
  func.func @transform_3(%arg0: i32) -> (i32, i32, i32, i32) {
    %c0_i32 = arith.constant 0 : i32
    %c0_i32_0 = arith.constant 0 : i32
    %c0_i32_1 = arith.constant 0 : i32
    %c0_i32_2 = arith.constant 0 : i32
    return %arg0, %c0_i32, %c0_i32_0, %c0_i32_1 : i32, i32, i32, i32
  }
  func.func @transform_4(%arg0: i32) -> (i32, i32, i32) {
    %c0_i32 = arith.constant 0 : i32
    %c0_i32_0 = arith.constant 0 : i32
    %c0_i32_1 = arith.constant 0 : i32
    %c0_i32_2 = arith.constant 0 : i32
    return %c0_i32, %c0_i32_0, %c0_i32_1 : i32, i32, i32
  }
  func.func @transform_5(%arg0: i32) -> (i32, i32, i32) {
    %c0_i32 = arith.constant 0 : i32
    %c0_i32_0 = arith.constant 0 : i32
    %c0_i32_1 = arith.constant 0 : i32
    return %arg0, %c0_i32, %c0_i32_0 : i32, i32, i32
  }
  func.func @transform_6(%arg0: i32) -> (i32, i32) {
    %c0_i32 = arith.constant 0 : i32
    %c0_i32_0 = arith.constant 0 : i32
    %c0_i32_1 = arith.constant 0 : i32
    return %c0_i32, %c0_i32_0 : i32, i32
  }
  func.func @transform_7(%arg0: i32) -> (i32, i32) {
    %c0_i32 = arith.constant 0 : i32
    %c0_i32_0 = arith.constant 0 : i32
    %c0_i32_1 = arith.constant 0 : i32
    return %c0_i32, %c0_i32_0 : i32, i32
  }
  func.func @transform_8(%arg0: i32) -> (i32, i32) {
    %c0_i32 = arith.constant 0 : i32
    %c0_i32_0 = arith.constant 0 : i32
    %c0_i32_1 = arith.constant 0 : i32
    return %c0_i32, %c0_i32_0 : i32, i32
  }
  func.func @transform_9(%arg0: i32) -> (i32, i32, i32, i32) {
    %c0_i32 = arith.constant 0 : i32
    %c0_i32_0 = arith.constant 0 : i32
    %c0_i32_1 = arith.constant 0 : i32
    %c0_i32_2 = arith.constant 0 : i32
    return %arg0, %c0_i32, %c0_i32_0, %c0_i32_1 : i32, i32, i32, i32
  }
  func.func @transform_10(%arg0: i32) -> (i32, i32, i32, i32) {
    %c0_i32 = arith.constant 0 : i32
    %c0_i32_0 = arith.constant 0 : i32
    %c0_i32_1 = arith.constant 0 : i32
    %c0_i32_2 = arith.constant 0 : i32
    return %arg0, %c0_i32, %c0_i32_0, %c0_i32_1 : i32, i32, i32, i32
  }
}

</mosaic_0001>

<bundles_post_ra>
// kernel: tpu_custom_call.1
= control target key start
LH: loop header
LB: loop body
LE: loop exit
PB: predicated region body
PF: predicated region fallthrough
CT: control target
= control target key end

     0   :  { %s3098_s0 = inlined_call_operand.hbm [shape: f32[2,4,8,8], index: 0, kind: input, shape index: {}]   ;;  %s3099_s1 = inlined_call_operand.hbm [shape: f32[2,4,8,8], index: 1, kind: input, shape index: {}]   ;;  %s3100_s2 = inlined_call_operand.hbm [shape: f32[2,4,8,8], index: 2, kind: input, shape index: {}]   ;;  %s3101_s3 = inlined_call_operand.hbm [shape: f32[2,1,8,8], index: 3, kind: input, shape index: {}]   ;;  %s3102_s4 = inlined_call_operand.hbm [shape: f32[4,8,8], index: 4, kind: input, shape index: {}]   ;;  %s3103_s5 = inlined_call_operand.hbm [shape: f32[2,8,32], index: 5, kind: input, shape index: {}]   ;;  %s3104_s6 = inlined_call_operand.hbm [shape: f32[4,32], index: 6, kind: input, shape index: {}]   ;;  %s3105_s7 = inlined_call_operand.hbm [shape: f32[4,1], index: 7, kind: input, shape index: {}]   ;;  %s3106_s8 = inlined_call_operand.hbm [shape: f32[4,8], index: 8, kind: input, shape index: {}]   ;;  %s3107_s9 = inlined_call_operand.hbm [shape: f32[2,4,8,8], index: 9, kind: output, shape index: {0}]   ;;  %s3108_s10 = inlined_call_operand.hbm [shape: f32[2,4,8,8], index: 10, kind: output, shape index: {1}]  }
   0x1   :  { %3134 = sst [smem:[#allocation36_spill]] %s3099_s1 }
   0x2   :  { %3135 = sst [smem:[#allocation37_spill]] %s3102_s4 }
   0x3   :  { %3136 = sst [smem:[#allocation38_spill]] %s3104_s6 }
   0x4   :  { %3137 = sst [smem:[#allocation39_spill]] %s3105_s7 }
   0x5   :  { %3138 = sst [smem:[#allocation40_spill]] %s3107_s9 }
   0x6   :  { %3139 = sst [smem:[#allocation41_spill]] %s3108_s10 }
   0x7   :  { %16 = vsyncpa [#allocation3], 0 }
   0x8   :  { %18 = vsyncpa [#allocation3 + $0x1], 0 }
   0x9   :  { %19 = vsyncpa [#allocation6], 0 }
   0xa   :  { %21 = vsyncpa [#allocation6 + $0x1], 0 }
   0xb   :  { %22 = vsyncpa [#allocation9], 0 }
   0xc   :  { %24 = vsyncpa [#allocation9 + $0x1], 0 }
   0xd   :  { %25 = vsyncpa [#allocation12], 0 }
   0xe   :  { %27 = vsyncpa [#allocation12 + $0x1], 0 }
   0xf   :  { %28 = vsyncpa [#allocation15], 0 }
  0x10   :  { %29 = vsyncpa [#allocation4], 0 }
  0x11   :  { %31 = vsyncpa [#allocation4 + $0x1], 0 }
  0x12   :  { %32 = vsyncpa [#allocation19], 0 }
  0x13   :  { %34 = vsyncpa [#allocation19 + $0x1], 0  ;;  %s2498_s13 = smov 0   ;;  %s2500_s14 = smov 0  }
  0x14   :  { %s2502_s15 = smov 0   ;;  %s2504_s16 = smov 0  }
  0x15 LB: > { %3140 = sst [smem:[#allocation29_spill]] %s2410_s13  ;;  %s2519_s17 = sadd.s32 4294967295, %s2422_s16   ;;  %s2422_s16 = sphi %s2504_s16, %s3186_s16   ;;  %s2418_s15 = sphi %s2502_s15, %s3188_s15   ;;  %s2414_s14 = sphi %s2500_s14, %s3190_s14   ;;  %s2410_s13 = sphi %s2498_s13, %s3189_s13  }
  0x16   : > { %3141 = sst [smem:[#allocation30_spill]] %s2418_s15  ;;  %s1778_s18 = sadd.s32 4294967294, %s2422_s16  }
  0x17   : > { %3142 = sst [smem:[#allocation31_spill]] %s2519_s17  ;;  %p60_p0 = scmp.ne.s32.totalorder %s2414_s14, %s2410_s13 }
  0x18   : > { %p3109_p1 = scmp.eq.s32.totalorder %s2519_s17, 0  ;;  %p278_p3 = scmp.eq.s32.totalorder %s1778_s18, 1 }
  0x19   : > { %p1779_p5 = scmp.ge.s32.totalorder %s2422_s16, 1  ;;  %p311_p7 = scmp.lt.s32.totalorder %s2422_s16, 3 }
  0x1a   : > { %p2528_p4 = por %p3109_p1, %p60_p0  ;;  %p2533_p6 = por %p278_p3, %p60_p0 }
  0x1b   : > { %p2538_p8 = pnand %p1779_p5, %p311_p7  ;;  %s2424_s22 = smov [#allocation10]  }
  0x1c   : > { %s3143_s19 = scalar_select %p2528_p4, 1, 0 }
  0x1d   : > { %s3144_s20 = scalar_select %p2533_p6, 1, 0 }
  0x1e   : > { %s3146_s21 = scalar_select %p2538_p8, 1, 0 }
  0x1f   : > { %3145 = sst [smem:[#allocation32_spill]] %s3144_s20  ;;  %s323_s23 = sshll.u32 %s2424_s22, 4  ;;  %s2542_s23 = int_to_ptr.vmem [resolvable:$true] %s323_s23 }
  0x20   : > { %p1931_p9 = pneg %p2538_p8  ;;  %s2425_s25 = smov [#allocation13]  }
  0x21   : > { %s337_s26 = sshll.u32 %s2425_s25, 4  ;;  %s2426_s27 = smov [#allocation14]   ;;  %s2553_s26 = int_to_ptr.vmem [resolvable:$true] %s337_s26 }
  0x22   : > { %p2549_p11 = pnand %p1931_p9, %p3109_p1  ;;  %s2555_s28 = sshll.u32 %s2426_s27, 4  ;;  %s349_s28 = int_to_ptr.vmem [resolvable:$true] %s2555_s28 }
  0x23   : > { %s3148_s4 = sld [smem:[#allocation37_spill]] }
  0x24   : > { %s3147_s24 = scalar_select %p2549_p11, 1, 0 }
  0x25   : > { %p2565_p13 = pneg %p2549_p11 }
  0x27   : > { %s3149_s22 = scalar_select %p2565_p13, 1, 0 }
  0x29   : > { %s2038_s11 = scalar_lea.hbm %s3148_s4, 512 }
  0x2a   : > { %p2039_p12 = scmp.ne.s32.totalorder %s3148_s4, %s2038_s11  ;;  %p2045_p5 = scmp.lt.u32.totalorder %s2038_s11, %s3148_s4 }
  0x2c   : > { %p2041_p0 = pnand %p2565_p13, %p2039_p12 }
  0x2e   : > { %p2042_p3 = pneg %p2041_p0 }
  0x30   : > { %p2047_p7 = pnand %p2045_p5, %p2042_p3 }
  0x32   : > { %2050 = shalt.err (!%p2047_p7)
}
  0x33   : > { %s2051_s29 = scalar_lea.vmem %s2542_s23, 512  ;;  %p2059_p2 = scmp.lt.s32.totalorder %s2542_s23, %s2542_s23 }
  0x34   : > { %p2052_p9 = scmp.ne.s32.totalorder %s2542_s23, %s2051_s29  ;;  %p2060_p6 = scmp.lt.s32.totalorder %s2051_s29, %s2051_s29 }
  0x36   : > { %p2054_p10 = pnand %p2052_p9, %p2565_p13  ;;  %p2061_p12 = por %p2060_p6, %p2059_p2 }
  0x38   : > { %p2055_p1 = pneg %p2054_p10 }
  0x3a   : > { %p2062_p0 = pnand %p2061_p12, %p2055_p1 }
  0x3c   : > { %2065 = shalt.err (!%p2062_p0)
}
  0x3d   : > { %s3116_s30 = smov 128   ;;  %s3118_s11 = smov 8  }
  0x3e   : > { %1934 = dma.hbm_to_vmem [thread:$0]  (!%p2549_p11), %s3148_s4, 512, %s2542_s23, [#allocation9], %s3116_s30, %s3116_s30, %s3118_s11  }
  0x3f   : > { %s3150_s6 = sld [smem:[#allocation38_spill]] }
  0x45   : > { %s2066_s29 = scalar_lea.hbm %s3150_s6, 64 }
  0x46   : > { %p2067_p1 = scmp.ne.s32.totalorder %s3150_s6, %s2066_s29  ;;  %p2073_p10 = scmp.lt.u32.totalorder %s2066_s29, %s3150_s6 }
  0x48   : > { %p2069_p2 = pnand %p2067_p1, %p2565_p13 }
  0x4a   : > { %p2070_p6 = pneg %p2069_p2 }
  0x4c   : > { %p2075_p3 = pnand %p2073_p10, %p2070_p6 }
  0x4e   : > { %2078 = shalt.err (!%p2075_p3)
}
  0x4f   : > { %s2079_s23 = scalar_lea.vmem %s2553_s26, 64  ;;  %p2087_p12 = scmp.lt.s32.totalorder %s2553_s26, %s2553_s26 }
  0x50   : > { %p2080_p5 = scmp.ne.s32.totalorder %s2553_s26, %s2079_s23  ;;  %p2088_p0 = scmp.lt.s32.totalorder %s2079_s23, %s2079_s23 }
  0x52   : > { %p2082_p7 = pnand %p2080_p5, %p2565_p13  ;;  %p2089_p1 = por %p2088_p0, %p2087_p12 }
  0x54   : > { %p2083_p9 = pneg %p2082_p7 }
  0x56   : > { %p2090_p2 = pnand %p2089_p1, %p2083_p9 }
  0x58   : > { %2093 = shalt.err (!%p2090_p2)
}
  0x59   : > { %1937 = dma.hbm_to_vmem [thread:$0]  (!%p2549_p11), %s3150_s6, 64, %s2553_s26, [#allocation12]  }
  0x5a   : > { %s3151_s7 = sld [smem:[#allocation39_spill]] }
  0x60   : > { %s2094_s12 = scalar_lea.hbm %s3151_s7, 64 }
  0x61   : > { %p2095_p6 = scmp.ne.s32.totalorder %s3151_s7, %s2094_s12  ;;  %p2101_p5 = scmp.lt.u32.totalorder %s2094_s12, %s3151_s7 }
  0x63   : > { %p2097_p10 = pnand %p2095_p6, %p2565_p13 }
  0x65   : > { %p2098_p3 = pneg %p2097_p10 }
  0x67   : > { %p2103_p7 = pnand %p2101_p5, %p2098_p3 }
  0x69   : > { %2106 = shalt.err (!%p2103_p7)
}
  0x6a   : > { %s2107_s23 = scalar_lea.vmem %s349_s28, 64  ;;  %p2115_p1 = scmp.lt.s32.totalorder %s349_s28, %s349_s28 }
  0x6b   : > { %p2108_p9 = scmp.ne.s32.totalorder %s349_s28, %s2107_s23  ;;  %p2116_p2 = scmp.lt.s32.totalorder %s2107_s23, %s2107_s23 }
  0x6d   : > { %p2110_p12 = pnand %p2108_p9, %p2565_p13  ;;  %p2117_p4 = por %p2116_p2, %p2115_p1 }
  0x6f   : > { %p2111_p0 = pneg %p2110_p12 }
  0x71   : > { %p2118_p8 = pnand %p2117_p4, %p2111_p0 }
  0x73   : > { %2121 = shalt.err (!%p2118_p8)
}
  0x74   : > { %1940 = dma.hbm_to_vmem [thread:$0]  (!%p2549_p11), %s3151_s7, 64, %s349_s28, [#allocation15]  }
  0x75   : > { %s2632_s10 = sadd.s32 1, %s2422_s16   ;;  %s47_s20 = sadd.s32 1, %s2418_s15 }
  0x76   : > { %3152 = sst [smem:[#allocation33_spill]] %s2632_s10  ;;  %s44_s13 = ssub.s32 %s2422_s16, %s2632_s10 }
  0x77   : > { %p45_p4 = scmp.eq.s32.totalorder %s44_s13, 0  ;;  %p54_p8 = scmp.ne.s32.totalorder %s2418_s15, %s2414_s14 }
  0x78   : > { %p55_p6 = scmp.eq.s32.totalorder %s2422_s16, 0  ;;  %p1971_p10 = scmp.lt.s32.totalorder %s2422_s16, 2 }
  0x79   : > { %s2642_s12 = scalar_select %p45_p4, %s2418_s15, %s47_s20  }
  0x7a   : > { %p56_p3 = por %p55_p6, %p54_p8  ;;  %p3154_p5 = scmp.eq.s32.totalorder %s2519_s17, 1 }
  0x7b   : > { %3153 = sst [smem:[#allocation34_spill]] %s2642_s12  ;;  %s2651_s25 = sand.u32 1, %s2418_s15  }
  0x7c   : > { %p2646_p7 = por %p3154_p5, %p54_p8  ;;  %s2654_s28 = sshll.u32 %s2422_s16, 9 }
  0x7d   : > { %s2657_s27 = sshll.u32 %s2651_s25, 5  ;;  %p2659_p9 = pnand %p1971_p10, %p56_p3 }
  0x7e   : > { %s3155_s18 = scalar_select %p2646_p7, 1, 0 }
  0x7f   : > { %s3157_s29 = scalar_select %p2659_p9, 1, 0 }
  0x80   : > { %3156 = sst [smem:[#allocation35_spill]] %s3155_s18  ;;  %s2664_s23 = sand.u32 1, %s2422_s16  }
  0x81   : > { %s3158_s1 = sld [smem:[#allocation36_spill]]  ;;  %s395_s20 = scalar_lea.vmem [#allocation5], %s2657_s27 }
  0x82   : > { %s402_s30 = sshll.u32 %s395_s20, 4  ;;  %p2680_p0 = pneg %p2659_p9  ;;  %s2673_s30 = int_to_ptr.vmem [resolvable:$true] %s402_s30 }
  0x87   : > { %s2670_s13 = scalar_lea.hbm %s3158_s1, %s2654_s28  ;;  %s2127_s7 = scalar_lea.hbm %s3158_s1, 1024 }
  0x88   : > { %s2122_s4 = scalar_lea.hbm %s2670_s13, 512  ;;  %p2128_p4 = scmp.lt.u32.totalorder %s2670_s13, %s3158_s1 }
  0x89   : > { %p2123_p12 = scmp.ne.s32.totalorder %s2670_s13, %s2122_s4  ;;  %p2129_p8 = scmp.lt.u32.totalorder %s2127_s7, %s2122_s4 }
  0x8a   : > { %p2131_p10 = scmp.lt.u32.totalorder %s2122_s4, %s2670_s13 }
  0x8b   : > { %p2125_p1 = pnand %p2680_p0, %p2123_p12  ;;  %p2130_p6 = por %p2129_p8, %p2128_p4 }
  0x8d   : > { %p2126_p2 = pneg %p2125_p1  ;;  %p2132_p3 = por %p2131_p10, %p2130_p6 }
  0x8f   : > { %p2133_p5 = pnand %p2132_p3, %p2126_p2 }
  0x91   : > { %2136 = shalt.err (!%p2133_p5)
}
  0x92   : > { %s2137_s11 = scalar_lea.vmem %s2673_s30, 512  ;;  %s2429_s26 = smov [#allocation5]  }
  0x93   : > { %p2138_p12 = scmp.ne.s32.totalorder %s2673_s30, %s2137_s11  ;;  %s2142_s9 = sshll.u32 %s2429_s26, 4  ;;  %s2143_s9 = int_to_ptr.vmem [resolvable:$false] %s2142_s9 }
  0x94   : > { %s2144_s12 = scalar_lea.vmem %s2143_s9, 1024  ;;  %p2145_p11 = scmp.lt.s32.totalorder %s2673_s30, %s2143_s9 }
  0x95   : > { %p2140_p1 = pnand %p2138_p12, %p2680_p0  ;;  %p2146_p13 = scmp.lt.s32.totalorder %s2144_s12, %s2137_s11 }
  0x97   : > { %p2141_p7 = pneg %p2140_p1  ;;  %p2147_p4 = por %p2146_p13, %p2145_p11 }
  0x99   : > { %p2148_p8 = pnand %p2147_p4, %p2141_p7 }
  0x9b   : > { %2151 = shalt.err (!%p2148_p8)
}
  0x9c   : > { %s3160_s4 = smov 8   ;;  %s3161_s7 = smov 128  }
  0x9d   : > { %s3162_s20 = scalar_lea.sflag [#allocation6], %s2664_s23  ;;  %s2430_s1 = smov [#allocation16]  }
  0x9e   : > { %1950 = dma.hbm_to_vmem [thread:$0]  (!%p2659_p9), %s2670_s13, 512, %s2673_s30, %s3162_s20, %s3161_s7, %s3161_s7, %s3160_s4  }
  0x9f   : > { %s359_s26 = sshll.u32 %s2430_s1, 4  ;;  %s2152_s11 = scalar_lea.hbm %s3106_s8, 64  ;;  %s360_s26 = int_to_ptr.vmem [resolvable:$true] %s359_s26 }
  0xa0   : > { %p2153_p11 = scmp.ne.s32.totalorder %s3106_s8, %s2152_s11  ;;  %p3163_p13 = scmp.ne.s32.totalorder %s3149_s22, 0 }
  0xa1   : > { %p2159_p6 = scmp.lt.u32.totalorder %s2152_s11, %s3106_s8 }
  0xa2   : > { %p2155_p7 = pnand %p2153_p11, %p3163_p13 }
  0xa4   : > { %p2156_p2 = pneg %p2155_p7 }
  0xa6   : > { %p2161_p10 = pnand %p2159_p6, %p2156_p2 }
  0xa8   : > { %2164 = shalt.err (!%p2161_p10)
}
  0xa9   : > { %s2165_s30 = scalar_lea.vmem %s360_s26, 64  ;;  %p2173_p1 = scmp.lt.s32.totalorder %s360_s26, %s360_s26 }
  0xaa   : > { %p2166_p3 = scmp.ne.s32.totalorder %s360_s26, %s2165_s30  ;;  %p2174_p4 = scmp.lt.s32.totalorder %s2165_s30, %s2165_s30 }
  0xac   : > { %p2168_p5 = pnand %p2166_p3, %p3163_p13  ;;  %p2175_p8 = por %p2174_p4, %p2173_p1 }
  0xae   : > { %p2169_p12 = pneg %p2168_p5 }
  0xb0   : > { %p2176_p9 = pnand %p2175_p8, %p2169_p12 }
  0xb2   : > { %2179 = shalt.err (!%p2176_p9)
}
  0xb3   : > { %p3164_p11 = scmp.ne.s32.totalorder %s3147_s24, 0  ;;  %s2730_s22 = scalar_lea.hbm %s3098_s0, %s2654_s28 }
  0xb4   : > { %s374_s18 = scalar_lea.vmem [#allocation2], %s2657_s27  ;;  %s371_s24 = scalar_lea.sflag [#allocation3], %s2651_s25 }
  0xb5   : > { %1943 = dma.hbm_to_vmem [thread:$0]  (!%p3164_p11), %s3106_s8, 64, %s360_s26, [#allocation15]  }
  0xb6   : > { %s381_s13 = sshll.u32 %s374_s18, 4  ;;  %s2180_s20 = scalar_lea.hbm %s2730_s22, 512  ;;  %s2733_s13 = int_to_ptr.vmem [resolvable:$true] %s381_s13 }
  0xb7   : > { %p2181_p9 = scmp.ne.s32.totalorder %s2730_s22, %s2180_s20  ;;  %s2185_s11 = scalar_lea.hbm %s3098_s0, 1024 }
  0xb8   : > { %p2186_p2 = scmp.lt.u32.totalorder %s2730_s22, %s3098_s0  ;;  %p2187_p6 = scmp.lt.u32.totalorder %s2185_s11, %s2180_s20 }
  0xb9   : > { %p2183_p13 = pnand %p2181_p9, %p2680_p0  ;;  %p2189_p3 = scmp.lt.u32.totalorder %s2180_s20, %s2730_s22 }
  0xba   : > { %p2188_p10 = por %p2187_p6, %p2186_p2 }
  0xbb   : > { %p2184_p7 = pneg %p2183_p13 }
  0xbc   : > { %p2190_p5 = por %p2189_p3, %p2188_p10 }
  0xbe   : > { %p2191_p12 = pnand %p2190_p5, %p2184_p7 }
  0xc0   : > { %2194 = shalt.err (!%p2191_p12)
}
  0xc1   : > { %s2195_s1 = scalar_lea.vmem %s2733_s13, 512  ;;  %s2431_s15 = smov [#allocation2]  }
  0xc2   : > { %p2196_p1 = scmp.ne.s32.totalorder %s2733_s13, %s2195_s1  ;;  %s2200_s17 = sshll.u32 %s2431_s15, 4  ;;  %s2201_s17 = int_to_ptr.vmem [resolvable:$false] %s2200_s17 }
  0xc3   : > { %s2202_s10 = scalar_lea.vmem %s2201_s17, 1024  ;;  %p2203_p11 = scmp.lt.s32.totalorder %s2733_s13, %s2201_s17 }
  0xc4   : > { %p2198_p4 = pnand %p2196_p1, %p2680_p0  ;;  %p2204_p9 = scmp.lt.s32.totalorder %s2202_s10, %s2195_s1 }
  0xc6   : > { %p2199_p8 = pneg %p2198_p4  ;;  %p2205_p13 = por %p2204_p9, %p2203_p11 }
  0xc8   : > { %p2206_p2 = pnand %p2205_p13, %p2199_p8 }
  0xca   : > { %2209 = shalt.err (!%p2206_p2)
}
  0xcb   : > { %p3165_p7 = scmp.ne.s32.totalorder %s3157_s29, 0  ;;  %s2766_s26 = scalar_lea.hbm %s3100_s2, %s2654_s28 }
  0xcc   : > { %s416_s9 = scalar_lea.vmem [#allocation7], %s2657_s27  ;;  %s2210_s12 = scalar_lea.hbm %s2766_s26, 512 }
  0xcd   : > { %1947 = dma.hbm_to_vmem [thread:$0]  (!%p3165_p7), %s2730_s22, 512, %s2733_s13, %s371_s24, %s3161_s7, %s3161_s7, %s3160_s4  }
  0xce   : > { %s423_s11 = sshll.u32 %s416_s9, 4  ;;  %p2211_p6 = scmp.ne.s32.totalorder %s2766_s26, %s2210_s12  ;;  %s2769_s11 = int_to_ptr.vmem [resolvable:$true] %s423_s11 }
  0xcf   : > { %s2215_s13 = scalar_lea.hbm %s3100_s2, 1024  ;;  %p2216_p5 = scmp.lt.u32.totalorder %s2766_s26, %s3100_s2 }
  0xd0   : > { %p2213_p10 = pnand %p2211_p6, %p2680_p0  ;;  %p2217_p12 = scmp.lt.u32.totalorder %s2215_s13, %s2210_s12 }
  0xd1   : > { %p2219_p4 = scmp.lt.u32.totalorder %s2210_s12, %s2766_s26 }
  0xd2   : > { %p2214_p3 = pneg %p2213_p10  ;;  %p2218_p1 = por %p2217_p12, %p2216_p5 }
  0xd4   : > { %p2220_p8 = por %p2219_p4, %p2218_p1 }
  0xd6   : > { %p2221_p11 = pnand %p2220_p8, %p2214_p3 }
  0xd8   : > { %2224 = shalt.err (!%p2221_p11)
}
  0xd9   : > { %s2225_s27 = scalar_lea.vmem %s2769_s11, 512  ;;  %s2432_s1 = smov [#allocation7]  }
  0xda   : > { %p2226_p9 = scmp.ne.s32.totalorder %s2769_s11, %s2225_s27  ;;  %s2230_s15 = sshll.u32 %s2432_s1, 4  ;;  %s2231_s15 = int_to_ptr.vmem [resolvable:$false] %s2230_s15 }
  0xdb   : > { %s2232_s17 = scalar_lea.vmem %s2231_s15, 1024  ;;  %p2233_p6 = scmp.lt.s32.totalorder %s2769_s11, %s2231_s15 }
  0xdc   : > { %p2228_p13 = pnand %p2226_p9, %p2680_p0  ;;  %p2234_p10 = scmp.lt.s32.totalorder %s2232_s17, %s2225_s27 }
  0xde   : > { %p2229_p2 = pneg %p2228_p13  ;;  %p2235_p5 = por %p2234_p10, %p2233_p6 }
  0xe0   : > { %p2236_p12 = pnand %p2235_p5, %p2229_p2 }
  0xe2   : > { %2239 = shalt.err (!%p2236_p12)
}
  0xe3   : > { %s3166_s10 = scalar_lea.sflag [#allocation6], %s2664_s23  ;;  %s1794_s18 = sshll.u32 %s2651_s25, 3 }
  0xe4   : > { %1953 = dma.hbm_to_vmem [thread:$0]  (!%p3165_p7), %s2766_s26, 512, %s2769_s11, %s3166_s10, %s3161_s7, %s3161_s7, %s3160_s4  }
  0xe5   : > { %s1795_s20 = sshll.u32 %s2422_s16, 7  ;;  %s437_s22 = scalar_lea.vmem [#allocation8], %s1794_s18 }
  0xe6   : > { %s2804_s30 = scalar_lea.hbm %s3101_s3, %s1795_s20  ;;  %s444_s13 = sshll.u32 %s437_s22, 4  ;;  %s445_s13 = int_to_ptr.vmem [resolvable:$true] %s444_s13 }
  0xe7   : > { %s434_s24 = scalar_lea.sflag [#allocation9], %s2664_s23  ;;  %s2240_s28 = scalar_lea.hbm %s2804_s30, 128 }
  0xe8   : > { %p2241_p3 = scmp.ne.s32.totalorder %s2804_s30, %s2240_s28  ;;  %s2245_s26 = scalar_lea.hbm %s3101_s3, 256 }
  0xe9   : > { %p2246_p8 = scmp.lt.u32.totalorder %s2804_s30, %s3101_s3  ;;  %p2247_p11 = scmp.lt.u32.totalorder %s2245_s26, %s2240_s28 }
  0xea   : > { %p2243_p1 = pnand %p2241_p3, %p2680_p0  ;;  %p2249_p13 = scmp.lt.u32.totalorder %s2240_s28, %s2804_s30 }
  0xeb   : > { %p2248_p9 = por %p2247_p11, %p2246_p8 }
  0xec   : > { %p2244_p4 = pneg %p2243_p1 }
  0xed   : > { %p2250_p2 = por %p2249_p13, %p2248_p9 }
  0xef   : > { %p2251_p6 = pnand %p2250_p2, %p2244_p4 }
  0xf1   : > { %2254 = shalt.err (!%p2251_p6)
}
  0xf2   : > { %s2255_s1 = scalar_lea.vmem %s445_s13, 128  ;;  %s2433_s15 = smov [#allocation8]  }
  0xf3   : > { %p2256_p10 = scmp.ne.s32.totalorder %s445_s13, %s2255_s1  ;;  %s2260_s17 = sshll.u32 %s2433_s15, 4  ;;  %s2261_s17 = int_to_ptr.vmem [resolvable:$false] %s2260_s17 }
  0xf4   : > { %s2262_s10 = scalar_lea.vmem %s2261_s17, 256  ;;  %p2263_p3 = scmp.lt.s32.totalorder %s445_s13, %s2261_s17 }
  0xf5   : > { %p2258_p5 = pnand %p2256_p10, %p2680_p0  ;;  %p2264_p1 = scmp.lt.s32.totalorder %s2262_s10, %s2255_s1 }
  0xf7   : > { %p2259_p12 = pneg %p2258_p5  ;;  %p2265_p7 = por %p2264_p1, %p2263_p3 }
  0xf9   : > { %p2266_p8 = pnand %p2265_p7, %p2259_p12 }
  0xfb   : > { %2269 = shalt.err (!%p2266_p8)
}
  0xfc   : > { %p3167_p11 = scmp.ne.s32.totalorder %s3157_s29, 0  ;;  %s2831_s22 = scalar_lea.hbm %s3103_s5, %s1795_s20 }
  0xfd   : > { %s455_s28 = scalar_lea.vmem [#allocation11], %s1794_s18  ;;  %s452_s7 = scalar_lea.sflag [#allocation12], %s2664_s23 }
  0xfe   : > { %1956 = dma.hbm_to_vmem [thread:$0]  (!%p3167_p11), %s2804_s30, 128, %s445_s13, %s434_s24  }
  0xff   : > { %s462_s4 = sshll.u32 %s455_s28, 4  ;;  %s2270_s26 = scalar_lea.hbm %s2831_s22, 128  ;;  %s463_s4 = int_to_ptr.vmem [resolvable:$true] %s462_s4 }
 0x100   : > { %p2271_p7 = scmp.ne.s32.totalorder %s2831_s22, %s2270_s26  ;;  %s2275_s24 = scalar_lea.hbm %s3103_s5, 256 }
 0x101   : > { %p2276_p13 = scmp.lt.u32.totalorder %s2831_s22, %s3103_s5  ;;  %p2277_p2 = scmp.lt.u32.totalorder %s2275_s24, %s2270_s26 }
 0x102   : > { %p2273_p4 = pnand %p2271_p7, %p2680_p0  ;;  %p2279_p10 = scmp.lt.u32.totalorder %s2270_s26, %s2831_s22 }
 0x103   : > { %p2278_p6 = por %p2277_p2, %p2276_p13 }
 0x104   : > { %p2274_p9 = pneg %p2273_p4 }
 0x105   : > { %p2280_p5 = por %p2279_p10, %p2278_p6 }
 0x107   : > { %p2281_p12 = pnand %p2280_p5, %p2274_p9 }
 0x109   : > { %2284 = shalt.err (!%p2281_p12)
}
 0x10a   : > { %s2285_s25 = scalar_lea.vmem %s463_s4, 128  ;;  %s2434_s23 = smov [#allocation11]  }
 0x10b   : > { %p2286_p3 = scmp.ne.s32.totalorder %s463_s4, %s2285_s25  ;;  %s2290_s18 = sshll.u32 %s2434_s23, 4  ;;  %s2291_s18 = int_to_ptr.vmem [resolvable:$false] %s2290_s18 }
 0x10c   : > { %s2292_s27 = scalar_lea.vmem %s2291_s18, 256  ;;  %p2293_p7 = scmp.lt.s32.totalorder %s463_s4, %s2291_s18 }
 0x10d   : > { %p2288_p1 = pnand %p2286_p3, %p2680_p0  ;;  %p2294_p4 = scmp.lt.s32.totalorder %s2292_s27, %s2285_s25 }
 0x10f   : > { %p2289_p8 = pneg %p2288_p1  ;;  %p2295_p11 = por %p2294_p4, %p2293_p7 }
 0x111   : > { %p2296_p2 = pnand %p2295_p11, %p2289_p8 }
 0x113   : > { %2299 = shalt.err (!%p2296_p2)
}
 0x114   : > { %p3168_p13 = scmp.ne.s32.totalorder %s3157_s29, 0  ;;  %p3169_p9 = scmp.ne.s32.totalorder %s3146_s21, 0 }
 0x115   : > { %s2856_s6 = sand.u32 (!%p3169_p9), 1, %s2414_s14   ;;  %p3170_p0 = scmp.ne.s32.totalorder (!%p3169_p9), %s3143_s19, 0 }
 0x116   : > { %1959 = dma.hbm_to_vmem [thread:$0]  (!%p3168_p13), %s2831_s22, 128, %s463_s4, %s452_s7  }
 0x117   : > { %471 = sbr.rel (%p3169_p9) target bundleno = 1212 (0x4bc), region = 56  ;;  %s2859_s1 = sshll.u32 (!%p3169_p9), %s2856_s6, 5 }
 0x118   : > { %s474_s15 = scalar_lea.sflag (!%p3169_p9), [#allocation3], %s2856_s6  ;;  %s2863_s17 = scalar_lea.vmem (!%p3169_p9), [#allocation2], %s2859_s1 }
 0x11e   : > { %2373 = dma.done.wait (%p3170_p0), %s474_s15, 512  }
 0x11f   : > { %2375 = vsyncadd (%p3170_p0), %s474_s15, 4294966784  ;;  %s3171_s29 = sld [smem:[#allocation31_spill]]  ;;  %s2871_s9 = scalar_lea.vmem [#allocation5], %s2859_s1 }
 0x125   : > { %s482_s21 = sand.u32 1, %s3171_s29  }
 0x126   : > { %s483_s10 = scalar_lea.sflag [#allocation6], %s482_s21 }
 0x127   : > { %2377 = dma.done.wait (%p3170_p0), %s483_s10, 1024  }
 0x128   : > { %2379 = vsyncadd (%p3170_p0), %s483_s10, 4294966272  ;;  %s1802_s12 = sshll.u32 %s2856_s6, 3  ;;  %s2879_s22 = scalar_lea.vmem [#allocation7], %s2859_s1 }
 0x129   : > { %s501_s28 = scalar_lea.sflag [#allocation9], %s482_s21  ;;  %s2881_s4 = scalar_lea.vmem [#allocation8], %s1802_s12 }
 0x12a   : > { %2381 = dma.done.wait (%p3170_p0), %s501_s28, 128  }
 0x12b   : > { %2383 = vsyncadd (%p3170_p0), %s501_s28, 4294967168  ;;  %p3172_p11 = scmp.eq.s32.totalorder %s3171_s29, 0 }
 0x12d   : > { %2385 = dma.done.wait (%p3172_p11), [#allocation9], 512   ;;  %p3173_p6 = pmov %p3172_p11 }
 0x12e   : > { %s514_s7 = scalar_lea.sflag [#allocation12], %s482_s21  ;;  %s2891_s26 = scalar_lea.vmem [#allocation11], %s1802_s12 }
 0x12f   : > { %2387 = vsyncadd (%p3173_p6), [#allocation9], 4294966784 }
 0x130   : > { %2389 = dma.done.wait (%p3170_p0), %s514_s7, 128  }
 0x131   : > { %2391 = vsyncadd (%p3170_p0), %s514_s7, 4294967168  ;;  %p3174_p10 = pmov %p3173_p6 }
 0x132   : > { %p3175_p5 = pmov %p3173_p6 }
 0x133   : > { %2393 = dma.done.wait (%p3174_p10), [#allocation12], 64  }
 0x134   : > { %2395 = vsyncadd (%p3175_p5), [#allocation12], 4294967232  ;;  %p3176_p12 = pmov %p3175_p5 }
 0x135   : > { %p3177_p3 = pmov %p3175_p5 }
 0x136   : > { %2397 = dma.done.wait (%p3176_p12), [#allocation15], 128  }
 0x137   : > { %2399 = vsyncadd (%p3177_p3), [#allocation15], 4294967168  ;;  %v2435_v0 = vmov 0.0   ;;  %vm2436_vm0 = vmmov 0   ;;  %v1015_v1 = vlaneseq  ;;  %v2437_v2 = vmov 0   ;;  %v595_v7 = vld [vmem:[%s2871_s9] sm:$0xff] }
 0x138   : > { %1856 = vmatprep.subr.mxu0 %v2435_v0  ;;  %1858 = vmatprep.mubr.msk.f32.mxu0 %vm2436_vm0, %v2435_v0  ;;  %v2438_v3 = vmov 1966171168   ;;  %vm612_vm1 = vcmask 64512   ;;  %v591_v9 = vld [vmem:[%s2863_s17] sm:$0xff]  ;;  %v597_v10 = vld [vmem:[%s2871_s9 + $0x10] sm:$0xff]  ;;  %v596_v13 = vld [vmem:[%s2871_s9 + $0x8] sm:$0xff] }
 0x139   : > { %2021 = vset.pattern.permute.xlu0 %v2437_v2  ;;  %v1013_v4 = vunpack.c.l.s4 %v2438_v3  ;;  %1861 = vmatprep.subr.mxu1 %v2435_v0  ;;  %v2910_v5 = vshrl.u32 %v1015_v1, 7  ;;  %v610_v11 = vld [vmem:[#allocation14] sm:$0xf]  ;;  %v592_v17 = vld [vmem:[%s2863_s17 + $0x8] sm:$0xff]  ;;  %v593_v18 = vld [vmem:[%s2863_s17 + $0x10] sm:$0xff]  ;;  %vm926_vm2 = vcmask 261120  }
 0x13a   : > { %1863 = vmatprep.mubr.msk.f32.mxu1 %vm2436_vm0, %v2435_v0  ;;  %1857 = vmatpush3.xpose.msk.msra.mxu0 %vm612_vm1, %v595_v7  ;;  %v1820_v12 = vld.sshfl [vmem:[#allocation16] sm:$0x33 pattern:$0x75316420]  ;;  %v598_v19 = vld [vmem:[%s2871_s9 + $0x18] sm:$0xff]  ;;  %v2937_v24 = vld [vmem:[%s2879_s22 + $0x10] sm:$0xff] }
 0x13b   : > { %v1014_v6 = vunpack.c.0.s8 %v1013_v4  ;;  %1866 = vmatprep.subr.mxu0 %v2435_v0  ;;  %923 = vperm.xlu0 %2021, %v610_v11   ;;  %v1011_v14 = vcombine.high %v1820_v12, %v1820_v12  ;;  %v2923_v15 = vsub.s32 0, %v2910_v5  ;;  %v608_v20 = vld [vmem:[%s2891_s26] sm:$0xff]  ;;  %v600_v23 = vld [vmem:[%s2879_s22 + $0x8] sm:$0xff]  ;;  %v609_v28 = vld [vmem:[#allocation13] sm:$0xf]  ;;  %v1155_v49 = vsub.s32 3, %v2910_v5 }
 0x13c   : > { %1862 = vmatpush3.xpose.msk.msra.mxu1 %vm612_vm1, %v596_v13  ;;  %v594_v27 = vld [vmem:[%s2863_s17 + $0x18] sm:$0xff]  ;;  %v599_v32 = vld [vmem:[%s2879_s22] sm:$0xff]  ;;  %v1141_v57 = vsub.s32 1, %v2910_v5  ;;  %v1148_v59 = vsub.s32 2, %v2910_v5  ;;  %v1077_v63 = vand.u32 127, %v1015_v1  ;;  %v604_v2 = vld [vmem:[#allocation10] sm:$0xff] }
 0x13d   : > { %v1017_v8 = vsub.s32 %v1014_v6, %v2910_v5  ;;  %1859 = vmatmul.mubr.msk.f32.vlgmr.msra.gmra.mrb[0].mxu0 %vm612_vm1, %v591_v9  ;;  %1871 = vmatprep.subr.mxu1 %v2435_v0  ;;  %v2955_v33 = vld [vmem:[%s2879_s22 + $0x18] sm:$0xff]  ;;  %v607_v11 = vld [vmem:[#allocation10 + $0x18] sm:$0xff]  ;;  %s590_s19 = scalar_lea.vmem [#allocation18], %s2859_s1  ;;  %s3178_s30 = sld [smem:[#allocation35_spill]] }
 0x13e   : > { %1867 = vmatpush3.xpose.msk.msra.mxu0 %vm612_vm1, %v597_v10  ;;  %1868 = vmatprep.mubr.msk.f32.mxu0 %vm2436_vm0, %v2435_v0  ;;  %v1080_v6 = vsub.s32 %v1077_v63, %v2910_v5  ;;  %v605_v9 = vld [vmem:[#allocation10 + $0x8] sm:$0xff]  ;;  %s1836_s13 = sshll.u32 %s3171_s29, 9  ;;  %s3179_s11 = sld [smem:[#allocation41_spill]] }
 0x13f   : > { %v1018_v16 = vrot.slane %v1820_v12, %v1017_v8  ;;  %1876 = vmatprep.subr.mxu0 %v2435_v0  ;;  %v1025_v21 = vrot.slane %v1011_v14, %v1017_v8  ;;  %1864 = vmatmul.mubr.msk.f32.vlgmr.msra.gmra.mrb[0].mxu1 %vm612_vm1, %v592_v17  ;;  %v606_v17 = vld [vmem:[#allocation10 + $0x10] sm:$0xff]  ;;  %s1547_s23 = sshll.u32 %s590_s19, 4  ;;  %s1518_s18 = scalar_lea.sflag [#allocation19], %s2856_s6  ;;  %s3010_s23 = int_to_ptr.vmem [resolvable:$true] %s1547_s23 }
 0x140   : > { %1872 = vmatpush3.xpose.msk.msra.mxu1 %vm612_vm1, %v598_v19  ;;  %1873 = vmatprep.mubr.msk.f32.mxu1 %vm2436_vm0, %v2435_v0  ;;  %s2300_s27 = scalar_lea.vmem %s3010_s23, 512  ;;  %s2439_s15 = smov [#allocation18]  }
 0x141   : > { %v1026_v22 = vcombine.high %v1018_v16, %v1018_v16  ;;  %1869 = vmatmul.mubr.msk.f32.vlgmr.msra.gmra.mrb[2].mxu0 %vm612_vm1, %v593_v18  ;;  %v1035_v25 = vrot.slane %v1025_v21, %v2923_v15  ;;  %v1027_v29 = vcombine.high %v1025_v21, %v1025_v21  ;;  %1881 = vmatprep.subr.mxu1 %v2435_v0  ;;  %p2301_p1 = scmp.ne.s32.totalorder %s3010_s23, %s2300_s27  ;;  %s2304_s17 = sshll.u32 %s2439_s15, 4  ;;  %s2305_s17 = int_to_ptr.vmem [resolvable:$false] %s2304_s17 }
 0x142   : > { %1877 = vmatpush3.xpose.msk.msra.mxu0 %vm926_vm2, %v608_v20  ;;  %1878 = vmatprep.mubr.msk.f32.mxu0 %vm2436_vm0, %v2435_v0  ;;  %v1031_v39 = vrot.slane %v1018_v16, %v2923_v15  ;;  %s2306_s21 = scalar_lea.vmem %s2305_s17, 1024  ;;  %p2307_p2 = scmp.lt.s32.totalorder %s3010_s23, %s2305_s17 }
 0x143   : > { %v1039_v26 = vrot.slane %v1026_v22, %v2923_v15  ;;  %v1049_v30 = vmul.f32 %v1035_v25, %v600_v23  ;;  %1874 = vmatmul.mubr.msk.f32.vlgmr.msra.gmra.mrb[2].mxu1 %vm612_vm1, %v594_v27  ;;  %v1043_v34 = vrot.slane %v1027_v29, %v2923_v15  ;;  %1886 = vmatprep.subr.mxu0 %v2435_v0  ;;  %p3180_p8 = scmp.ne.s32.totalorder %s3178_s30, 0  ;;  %p2308_p13 = scmp.lt.s32.totalorder %s2306_s21, %s2300_s27 }
 0x144   : > { %1882 = vmatpush3.msra.mxu1 %v599_v32  ;;  %1883 = vmatprep.mubr.msk.f32.mxu1 %vm2436_vm0, %v2435_v0  ;;  %v1048_v40 = vmul.f32 %v1031_v39, %v599_v32  ;;  %s3008_s25 = scalar_lea.hbm %s3179_s11, %s1836_s13 }
 0x145   : > { %v1050_v31 = vmul.f32 %v1039_v26, %v2937_v24  ;;  %1879 = vmatmul.mubr.msk.f32.vlgmr.msra.gmra.mrb[4].mxu0 %vm926_vm2, %v609_v28  ;;  %v1055_v35 = vsel %vm612_vm1, %v1049_v30, 0.0  ;;  %v1051_v37 = vmul.f32 %v1043_v34, %v2955_v33  ;;  %1891 = vmatprep.subr.mxu1 %v2435_v0  ;;  %p2302_p7 = pnand %p2301_p1, %p3180_p8  ;;  %p2309_p9 = por %p2308_p13, %p2307_p2 }
 0x146   : > { %1056 = vadd.xlane.f32.xlu1 %v1055_v35  ;;  %1887 = vmatpush3.msra.mxu0 %v600_v23  ;;  %v1052_v41 = vsel %vm612_vm1, %v1048_v40, 0.0  ;;  %v603_v23 = vld [vmem:[%s2881_s4] sm:$0xff] }
 0x147   : > { %v1058_v36 = vsel %vm612_vm1, %v1050_v31, 0.0  ;;  %1888 = vmatprep.mubr.msk.f32.mxu0 %vm2436_vm0, %v2435_v0  ;;  %1896 = vmatprep.subr.mxu0 %v2435_v0  ;;  %v1061_v38 = vsel %vm612_vm1, %v1051_v37, 0.0  ;;  %p2303_p4 = pneg %p2302_p7 }
 0x149   : > { %p2310_p0 = pnand %p2309_p9, %p2303_p4 }
 0x14a   : > { %1059 = vadd.xlane.f32.xlu1 %v1058_v36 }
 0x14e   : > { %1062 = vadd.xlane.f32.xlu1 %v1061_v38 }
 0x15a   : > { %1053 = vadd.xlane.f32.xlu0 %v1052_v41 }
 0x1ba   : > { %v924_v48 = vpop.permute.xlu0 %923 }
 0x1d3   : > { %v1057_v61 = vpop.xlane.xlu1 %1056 }
 0x1d4   : > { %v1085_v1 = vrot.slane %v1057_v61, %v1080_v6 }
 0x1d7   : > { %v1060_v3 = vpop.xlane.xlu1 %1059 }
 0x1d8   : > { %v1089_v28 = vrot.slane %v1060_v3, %v1080_v6 }
 0x1db   : > { %v1063_v12 = vpop.xlane.xlu1 %1062 }
 0x1dc   : > { %v1093_v25 = vrot.slane %v1063_v12, %v1080_v6 }
 0x1e7   : > { %v1054_v8 = vpop.xlane.xlu0 %1053 }
 0x210   : > { %v685_v42 = vpop.f32.mrb[0].mxu0 }
 0x211   : > { %v1860_v43 = vpop.f32.mrb[1].mxu0  ;;  %v917_v62 = vmul.f32 0.35355338, %v685_v42 }
 0x212   : > { %v761_v44 = vpop.f32.mrb[0].mxu1 }
 0x213   : > { %v1865_v46 = vpop.f32.mrb[1].mxu1  ;;  %v1064_v4 = vadd.f32 %v917_v62, %v604_v2  ;;  %v918_v7 = vmul.f32 0.35355338, %v761_v44 }
 0x214   : > { %v837_v45 = vpop.f32.mrb[2].mxu0 }
 0x215   : > { %v1870_v47 = vpop.f32.mrb[3].mxu0  ;;  %v919_v13 = vmul.f32 0.35355338, %v837_v45  ;;  %v1068_v14 = vadd.f32 %v1064_v4, %v1054_v8  ;;  %v1065_v16 = vadd.f32 %v918_v7, %v605_v9 }
 0x216   : > { %v913_v50 = vpop.f32.mrb[2].mxu1 }
 0x217   : > { %v1875_v52 = vpop.f32.mrb[3].mxu1  ;;  %v920_v10 = vmul.f32 0.35355338, %v913_v50  ;;  %v1066_v19 = vadd.f32 %v919_v13, %v606_v17  ;;  %v1069_v21 = vadd.f32 %v1065_v16, %v1057_v61 }
 0x218   : > { %v999_v51 = vpop.f32.mrb[4].mxu0 }
 0x219   : > { %v1000_v53 = vadd.f32 %v999_v51, %v924_v48  ;;  %v1880_v54 = vpop.f32.mrb[5].mxu0  ;;  %v1067_v18 = vadd.f32 %v920_v10, %v607_v11  ;;  %v1070_v27 = vadd.f32 %v1066_v19, %v1060_v3  ;;  %v1129_v29 = vadd.f32 %v1085_v1, %v1069_v21 }
 0x21b   : > { %v1135_v55 = vrot.slane %v1000_v53, %v2923_v15  ;;  %v1156_v56 = vrot.slane %v1000_v53, %v1155_v49  ;;  %v1142_v58 = vrot.slane %v1000_v53, %v1141_v57  ;;  %v1149_v60 = vrot.slane %v1000_v53, %v1148_v59 }
 0x21c   : > { %v1081_v15 = vrot.slane %v1054_v8, %v1080_v6  ;;  %v1071_v5 = vadd.f32 %v1067_v18, %v1063_v12  ;;  %v1130_v37 = vadd.f32 %v1089_v28, %v1070_v27 }
 0x21d   : > { %1137 = vbcast.lane.b32.xlu1 %v1135_v55, 256  ;;  %1158 = vbcast.lane.b32.xlu0 %v1156_v56, 256 }
 0x21e   : > { %v1128_v20 = vadd.f32 %v1081_v15, %v1068_v14  ;;  %v1131_v32 = vadd.f32 %v1093_v25, %v1071_v5 }
 0x221   : > { %1144 = vbcast.lane.b32.xlu1 %v1142_v58, 256 }
 0x225   : > { %1151 = vbcast.lane.b32.xlu1 %v1149_v60, 256 }
 0x28f   : > { %v1138_v22 = vpop.permute.xlu1 %1137  ;;  %v1159_v36 = vpop.permute.xlu0 %1158 }
 0x290   : > { %v1160_v26 = vadd.f32 %v1138_v22, %v1128_v20  ;;  %v1163_v40 = vadd.f32 %v1159_v36, %v1131_v32 }
 0x292   : > { %v1164_v30 = vadd.f32 %v1160_v26, %v603_v23  ;;  %v1167_v45 = vadd.f32 %v1163_v40, %v603_v23 }
 0x293   : > { %v1145_v31 = vpop.permute.xlu1 %1144 }
 0x294   : > { %v1161_v34 = vadd.f32 %v1145_v31, %v1129_v29  ;;  %v1168_v35 = vsel %vm612_vm1, %v1164_v30, -inf  ;;  %v1177_v46 = vsel %vm612_vm1, %v1167_v45, -inf }
 0x295   : > { %1169 = vmax.xlane.f32.xlu1 %v1168_v35 }
 0x296   : > { %v1165_v38 = vadd.f32 %v1161_v34, %v603_v23 }
 0x297   : > { %v1152_v39 = vpop.permute.xlu1 %1151 }
 0x298   : > { %v1162_v41 = vadd.f32 %v1152_v39, %v1130_v37  ;;  %v1171_v42 = vsel %vm612_vm1, %v1165_v38, -inf }
 0x299   : > { %1172 = vmax.xlane.f32.xlu0 %v1171_v42 }
 0x29a   : > { %v1166_v43 = vadd.f32 %v1162_v41, %v603_v23 }
 0x29c   : > { %v1174_v44 = vsel %vm612_vm1, %v1166_v43, -inf }
 0x29d   : > { %1175 = vmax.xlane.f32.xlu1 %v1174_v44 }
 0x2a1   : > { %1178 = vmax.xlane.f32.xlu1 %v1177_v46 }
 0x322   : > { %v1170_v47 = vpop.xlane.xlu1 %1169 }
 0x323   : > { %v1180_v48 = vsub.f32 %v1164_v30, %v1170_v47 }
 0x325   : > { %v1184_v49 = vmul.f32 1.442695, %v1180_v48 }
 0x326   : > { %v1173_v50 = vpop.xlane.xlu0 %1172 }
 0x327   : > { %2022 = vpow2.f32 %v1184_v49  ;;  %v1181_v51 = vsub.f32 %v1165_v38, %v1173_v50 }
 0x329   : > { %v1186_v52 = vmul.f32 1.442695, %v1181_v51 }
 0x32a   : > { %v1176_v53 = vpop.xlane.xlu1 %1175 }
 0x32b   : > { %2024 = vpow2.f32 %v1186_v52  ;;  %v1182_v54 = vsub.f32 %v1166_v43, %v1176_v53 }
 0x32d   : > { %v1188_v55 = vmul.f32 1.442695, %v1182_v54 }
 0x32e   : > { %v1179_v56 = vpop.xlane.xlu1 %1178 }
 0x32f   : > { %2026 = vpow2.f32 %v1188_v55  ;;  %v1183_v57 = vsub.f32 %v1167_v45, %v1179_v56 }
 0x331   : > { %v2023_v58 = vpop.eup %2022  ;;  %v1190_v59 = vmul.f32 1.442695, %v1183_v57 }
 0x332   : > { %v1192_v60 = vsel %vm612_vm1, %v2023_v58, 0.0 }
 0x333   : > { %2028 = vpow2.f32 %v1190_v59  ;;  %1193 = vadd.xlane.f32.xlu1 %v1192_v60 }
 0x335   : > { %v2025_v61 = vpop.eup %2024 }
 0x336   : > { %v1195_v62 = vsel %vm612_vm1, %v2025_v61, 0.0 }
 0x337   : > { %1196 = vadd.xlane.f32.xlu1 %v1195_v62 }
 0x339   : > { %v2027_v63 = vpop.eup %2026 }
 0x33a   : > { %v1198_v2 = vsel %vm612_vm1, %v2027_v63, 0.0 }
 0x33b   : > { %1199 = vadd.xlane.f32.xlu0 %v1198_v2 }
 0x33d   : > { %v2029_v3 = vpop.eup %2028 }
 0x33e   : > { %v1201_v4 = vsel %vm612_vm1, %v2029_v3, 0.0 }
 0x33f   : > { %1202 = vadd.xlane.f32.xlu1 %v1201_v4 }
 0x3c0   : > { %v1194_v6 = vpop.xlane.xlu1 %1193 }
 0x3c1   : > { %2030 = vrcp.f32 %v1194_v6 }
 0x3c4   : > { %v1197_v7 = vpop.xlane.xlu1 %1196 }
 0x3c5   : > { %2032 = vrcp.f32 %v1197_v7 }
 0x3c8   : > { %v1200_v8 = vpop.xlane.xlu0 %1199 }
 0x3c9   : > { %2034 = vrcp.f32 %v1200_v8 }
 0x3cb   : > { %v2031_v9 = vpop.eup %2030 }
 0x3cc   : > { %v1205_v10 = vmul.f32 %v2031_v9, %v2023_v58  ;;  %v1203_v11 = vpop.xlane.xlu1 %1202 }
 0x3cd   : > { %2036 = vrcp.f32 %v1203_v11 }
 0x3ce   : > { %1212 = vst.msk [vmem:[%s590_s19] sm:$0xff] %vm612_vm1, %v1205_v10  ;;  %1884 = vmatmul.mubr.msk.f32.vlgmr.msra.gmra.mrb[4].mxu1 %vm612_vm1, %v1205_v10 }
 0x3cf   : > { %v2033_v12 = vpop.eup %2032  ;;  %1892 = vmatpush3.msra.mxu1 %v2937_v24  ;;  %1893 = vmatprep.mubr.msk.f32.mxu1 %vm2436_vm0, %v2435_v0 }
 0x3d0   : > { %v1207_v13 = vmul.f32 %v2033_v12, %v2025_v61 }
 0x3d2   : > { %1213 = vst.msk [vmem:[%s590_s19 + $0x8] sm:$0xff] %vm612_vm1, %v1207_v13  ;;  %1889 = vmatmul.mubr.msk.f32.vlgmr.msra.gmra.mrb[6].mxu0 %vm612_vm1, %v1207_v13 }
 0x3d3   : > { %v2035_v14 = vpop.eup %2034  ;;  %1897 = vmatpush3.msra.mxu0 %v2955_v33  ;;  %1898 = vmatprep.mubr.msk.f32.mxu0 %vm2436_vm0, %v2435_v0 }
 0x3d4   : > { %v1209_v15 = vmul.f32 %v2035_v14, %v2027_v63 }
 0x3d6   : > { %1214 = vst.msk [vmem:[%s590_s19 + $0x10] sm:$0xff] %vm612_vm1, %v1209_v15  ;;  %1894 = vmatmul.mubr.msk.f32.vlgmr.msra.gmra.mrb[6].mxu1 %vm612_vm1, %v1209_v15 }
 0x3d7   : > { %v2037_v24 = vpop.eup %2036 }
 0x3d8   : > { %v1211_v16 = vmul.f32 %v2037_v24, %v2029_v3 }
 0x3da   : > { %1215 = vst.msk [vmem:[%s590_s19 + $0x18] sm:$0xff] %vm612_vm1, %v1211_v16  ;;  %1899 = vmatmul.mubr.msk.f32.vlgmr.msra.gmra.mrb[8].mxu0 %vm612_vm1, %v1211_v16 }
 0x3db   : > { %2313 = shalt.err (!%p2310_p0)
}
 0x3dc   : > { %s2314_s10 = scalar_lea.hbm %s3008_s25, 512  ;;  %s2318_s22 = scalar_lea.hbm %s3179_s11, 1024 }
 0x3dd   : > { %p2315_p11 = scmp.ne.s32.totalorder %s3008_s25, %s2314_s10  ;;  %p2319_p5 = scmp.lt.u32.totalorder %s3008_s25, %s3179_s11 }
 0x3de   : > { %p2320_p12 = scmp.lt.u32.totalorder %s2318_s22, %s2314_s10  ;;  %p2322_p1 = scmp.lt.u32.totalorder %s2314_s10, %s3008_s25 }
 0x3df   : > { %p2316_p6 = pnand %p2315_p11, %p3180_p8 }
 0x3e0   : > { %p2321_p3 = por %p2320_p12, %p2319_p5 }
 0x3e1   : > { %p2317_p10 = pneg %p2316_p6 }
 0x3e2   : > { %p2323_p7 = por %p2322_p1, %p2321_p3 }
 0x3e4   : > { %p2324_p4 = pnand %p2323_p7, %p2317_p10 }
 0x3e6   : > { %2327 = shalt.err (!%p2324_p4)
}
 0x3e7   : > { %s2440_s7 = smov 128   ;;  %s2441_s26 = smov 8  }
 0x3e8   : > { %1928 = dma.vmem_to_hbm [thread:$0]  (%p3180_p8), %s3010_s23, 512, %s3008_s25, %s1518_s18, %s2440_s7, %s2440_s7, %s2441_s26  }
 0x3e9   : > { %s583_s19 = scalar_lea.vmem [#allocation17], %s2859_s1  ;;  %s3181_s23 = sld [smem:[#allocation40_spill]] }
 0x3ea   : > { %s1531_s24 = sshll.u32 %s583_s19, 4  ;;  %s1513_s18 = scalar_lea.sflag [#allocation4], %s2856_s6  ;;  %s3043_s24 = int_to_ptr.vmem [resolvable:$true] %s1531_s24 }
 0x3eb   : > { %s2328_s27 = scalar_lea.vmem %s3043_s24, 512  ;;  %s2442_s15 = smov [#allocation17]  }
 0x3ec   : > { %p2329_p2 = scmp.ne.s32.totalorder %s3043_s24, %s2328_s27  ;;  %s2332_s29 = sshll.u32 %s2442_s15, 4  ;;  %s2333_s29 = int_to_ptr.vmem [resolvable:$false] %s2332_s29 }
 0x3ed   : > { %s2334_s17 = scalar_lea.vmem %s2333_s29, 1024  ;;  %p2335_p0 = scmp.lt.s32.totalorder %s3043_s24, %s2333_s29 }
 0x3ee   : > { %p2330_p13 = pnand %p2329_p2, %p3180_p8  ;;  %p2336_p11 = scmp.lt.s32.totalorder %s2334_s17, %s2328_s27 }
 0x3ef   : > { %s3050_s1 = scalar_lea.hbm %s3181_s23, %s1836_s13 }
 0x3f0   : > { %p2331_p9 = pneg %p2330_p13  ;;  %p2337_p6 = por %p2336_p11, %p2335_p0 }
 0x3f2   : > { %p2338_p10 = pnand %p2337_p6, %p2331_p9 }
 0x4a1   : > { %v1285_v0 = vpop.f32.mrb[4].mxu1 }
 0x4a2   : > { %1508 = vst.msk [vmem:[%s583_s19] sm:$0xff] %vm612_vm1, %v1285_v0  ;;  %v1885_v33 = vpop.f32.mrb[5].mxu1 }
 0x4a5   : > { %v1358_v17 = vpop.f32.mrb[6].mxu0 }
 0x4a6   : > { %1509 = vst.msk [vmem:[%s583_s19 + $0x8] sm:$0xff] %vm612_vm1, %v1358_v17  ;;  %v1890_v18 = vpop.f32.mrb[7].mxu0 }
 0x4a9   : > { %v1431_v19 = vpop.f32.mrb[6].mxu1 }
 0x4aa   : > { %1510 = vst.msk [vmem:[%s583_s19 + $0x10] sm:$0xff] %vm612_vm1, %v1431_v19  ;;  %v1895_v1 = vpop.f32.mrb[7].mxu1 }
 0x4ad   : > { %v1504_v20 = vpop.f32.mrb[8].mxu0 }
 0x4ae   : > { %1511 = vst.msk [vmem:[%s583_s19 + $0x18] sm:$0xff] %vm612_vm1, %v1504_v20  ;;  %v1900_v21 = vpop.f32.mrb[9].mxu0 }
 0x4af   : > { %2341 = shalt.err (!%p2338_p10)
}
 0x4b0   : > { %s2342_s13 = scalar_lea.hbm %s3050_s1, 512  ;;  %s2346_s9 = scalar_lea.hbm %s3181_s23, 1024 }
 0x4b1   : > { %p2343_p5 = scmp.ne.s32.totalorder %s3050_s1, %s2342_s13  ;;  %p2347_p1 = scmp.lt.u32.totalorder %s3050_s1, %s3181_s23 }
 0x4b2   : > { %p2348_p7 = scmp.lt.u32.totalorder %s2346_s9, %s2342_s13  ;;  %p2350_p2 = scmp.lt.u32.totalorder %s2342_s13, %s3050_s1 }
 0x4b3   : > { %p2344_p12 = pnand %p2343_p5, %p3180_p8 }
 0x4b4   : > { %p2349_p4 = por %p2348_p7, %p2347_p1 }
 0x4b5   : > { %p2345_p3 = pneg %p2344_p12 }
 0x4b6   : > { %p2351_p13 = por %p2350_p2, %p2349_p4 }
 0x4b8   : > { %p2352_p9 = pnand %p2351_p13, %p2345_p3 }
 0x4ba   : > { %2355 = shalt.err (!%p2352_p9)
}
 0x4bb   : > { %1927 = dma.vmem_to_hbm [thread:$0]  (%p3180_p8), %s3043_s24, 512, %s3050_s1, %s1513_s18, %s2440_s7, %s2440_s7, %s2441_s26  }
 0x4bc PF: > { %s3182_s28 = sld [smem:[#allocation29_spill]]  ;;  %s3183_s4 = sld [smem:[#allocation32_spill]] }
 0x4bd   : > { %p3185_p11 = scmp.ge.s32.totalorder %s2422_s16, 2 }
 0x4c2   : > { %s1562_s19 = sand.u32 1, %s3182_s28   ;;  %p3184_p0 = scmp.ne.s32.totalorder %s3183_s4, 0 }
 0x4c3   : > { %s1563_s20 = scalar_lea.sflag [#allocation4], %s1562_s19 }
 0x4c4   : > { %p1961_p6 = pnand %p3185_p11, %p3184_p0 }
 0x4c6   : > { %2401 = dma.done.wait (!%p1961_p6), %s1563_s20, 512  }
 0x4c7   : > { %2403 = vsyncadd (!%p1961_p6), %s1563_s20, 4294966784  ;;  %s1572_s30 = scalar_lea.sflag [#allocation19], %s1562_s19 }
 0x4c8   : > { %2405 = dma.done.wait (!%p1961_p6), %s1572_s30, 512  }
 0x4c9   : > { %2407 = vsyncadd (!%p1961_p6), %s1572_s30, 4294966784  ;;  %s3186_s16 = sld [smem:[#allocation33_spill]]  ;;  %s3187_s6 = sld [smem:[#allocation30_spill]] }
 0x4ca   : > { %s3188_s15 = sld [smem:[#allocation34_spill]]  ;;  %s3189_s13 = smov %s2414_s14 }
 0x4cf   : > { %p37_p8 = scmp.ge.s32.totalorder %s3186_s16, 4   ;;  %s3190_s14 = smov %s3187_s6 }
 0x4d1   :  { %39 = sbr.rel (!%p37_p8) target bundleno = 21 (0x15), region = 184 }
 0x4d8   :  { %1577 = vsyncpa [#allocation3], 1 }
 0x4d9   :  { %1579 = vsyncpa [#allocation3 + $0x1], 1 }
 0x4da   :  { %1580 = vsyncpa [#allocation6], 1 }
 0x4db   :  { %1582 = vsyncpa [#allocation6 + $0x1], 1 }
 0x4dc   :  { %1583 = vsyncpa [#allocation9], 1 }
 0x4dd   :  { %1585 = vsyncpa [#allocation9 + $0x1], 1 }
 0x4de   :  { %1586 = vsyncpa [#allocation12], 1 }
 0x4df   :  { %1588 = vsyncpa [#allocation12 + $0x1], 1 }
 0x4e0   :  { %1589 = vsyncpa [#allocation15], 1 }
 0x4e1   :  { %1590 = vsyncpa [#allocation4], 1 }
 0x4e2   :  { %1592 = vsyncpa [#allocation4 + $0x1], 1 }
 0x4e3   :  { %1593 = vsyncpa [#allocation19], 1 }
 0x4e4   :  { %1595 = vsyncpa [#allocation19 + $0x1], 1 }

</bundles_post_ra>
